<compile_context>
chip_gen: v7x
topology: tpu7x:2x2x1
jax: 0.10.0
libtpu: 0.0.40
codegen_flags: <defaults>
</compile_context>

<pallas_src>
import jax
import jax.numpy as jnp
from jax.experimental import pallas as pl
from jax.experimental.pallas import tpu as pltpu


def controller_kernel(x_ref, w_ref, nb_ref, o_ref):
    # x_ref: (TB, D)  w_ref: (D, A)  nb_ref: (1, A) holding -bias  o_ref: (TB, A)
    z = jnp.dot(x_ref[...], w_ref[...], preferred_element_type=jnp.float32)
    # sigmoid(z + b) >= 0.5  <=>  z + b >= 0  <=>  z >= -b   (exact; no EUP op)
    o_ref[...] = jnp.where(z >= nb_ref[...],
                           jnp.float32(1.0),
                           jnp.float32(0.0)).astype(o_ref.dtype)


def controller_forward(x, w_t, b, *, block_b=128):
    """x: (B, D) f32, w_t: (D, A) f32 (transposed PyTorch weight), b: (A,) f32."""
    B, D = x.shape
    A = w_t.shape[1]

    # Batch tile: multiple of 8 sublanes, capped at block_b.
    TB = min(block_b, max(8, B))
    TB = ((TB + 7) // 8) * 8
    Bp = ((B + TB - 1) // TB) * TB
    if Bp != B:
        # Pad batch to a whole number of tiles; padded rows are sliced off below.
        x = jnp.pad(x, ((0, Bp - B), (0, 0)))

    neg_b = (-b).reshape(1, A).astype(jnp.float32)

    out = pl.pallas_call(
        controller_kernel,
        out_shape=jax.ShapeDtypeStruct((Bp, A), jnp.float32),
        grid=(Bp // TB,),
        in_specs=[
            pl.BlockSpec((TB, D), lambda i: (i, 0)),   # x: tiled over batch
            pl.BlockSpec((D, A), lambda i: (0, 0)),    # W: same block every step
            pl.BlockSpec((1, A), lambda i: (0, 0)),    # -b: same block every step
        ],
        out_specs=pl.BlockSpec((TB, A), lambda i: (i, 0)),
        compiler_params=pltpu.CompilerParams(
            dimension_semantics=("parallel",)),        # v7x: split batch over 2 TCs
    )(x, w_t, neg_b)
    return out[:B]


def pure_jax_ref(x, w_t, b):
    # Exactly equivalent to torch.where(torch.sigmoid(x @ W.T + b) >= 0.5, 1, 0):
    # sigmoid is monotone with sigmoid(0) == 0.5.
    return jnp.where(x @ w_t >= -b[None, :], 1.0, 0.0).astype(jnp.float32)


if __name__ == "__main__":
    # Small shapes consistent with the module: input_size=256, action_size=12.
    D, A = 256, 12
    key = jax.random.PRNGKey(0)
    kx1, kx2, kw, kb = jax.random.split(key, 4)

    # Deterministic "Linear" params (PyTorch weight is (A, D); we store transpose (D, A)).
    bound = 1.0 / (D ** 0.5)
    w_pt = jax.random.uniform(kw, (A, D), minval=-bound, maxval=bound, dtype=jnp.float32)
    b = jax.random.uniform(kb, (A,), minval=-bound, maxval=bound, dtype=jnp.float32)
    w_t = w_pt.T

    # Case 1: batch that exercises the grid (B=16 -> two batch tiles of 8).
    x1 = jax.random.normal(kx1, (16, D), dtype=jnp.float32)
    out1 = jax.block_until_ready(controller_forward(x1, w_t, b, block_b=8))
    ref1 = pure_jax_ref(x1, w_t, b)
    assert out1.shape == (16, A)
    assert bool(jnp.all(out1 == ref1))

    # Case 2: ragged batch (B=5) exercising the padding path.
    x2 = jax.random.normal(kx2, (5, D), dtype=jnp.float32)
    out2 = jax.block_until_ready(controller_forward(x2, w_t, b))
    ref2 = pure_jax_ref(x2, w_t, b)
    assert out2.shape == (5, A)
    assert bool(jnp.all(out2 == ref2))

    print("KERNEL_OK")
</pallas_src>

<mosaic_0001>
module attributes {stable_mosaic.version = 11 : i64} {
  func.func @controller_kernel(%arg0: i32, %arg1: memref<8x256xf32, #tpu.memory_space<vmem>>, %arg2: memref<256x12xf32, #tpu.memory_space<vmem>>, %arg3: memref<1x12xf32, #tpu.memory_space<vmem>>, %arg4: memref<8x12xf32, #tpu.memory_space<vmem>>) attributes {dimension_semantics = [#tpu.dimension_semantics<parallel>], iteration_bounds = array<i64: 2>, scalar_prefetch = 0 : i64, scratch_operands = 0 : i64, tpu.core_type = #tpu.core_type<tc>, window_params = [{transform_indices = @transform_0, window_bounds = array<i64: 8, 256>}, {pipeline_mode = #tpu.pipeline_mode<synchronous>, transform_indices = @transform_1, window_bounds = array<i64: 256, 12>}, {pipeline_mode = #tpu.pipeline_mode<synchronous>, transform_indices = @transform_2, window_bounds = array<i64: 1, 12>}, {transform_indices = @transform_3, window_bounds = array<i64: 8, 12>}]} {
    %c0 = arith.constant 0 : index
    %c0_0 = arith.constant 0 : index
    %0 = vector.load %arg1[%c0, %c0_0] : memref<8x256xf32, #tpu.memory_space<vmem>>, vector<8x256xf32>
    %c0_1 = arith.constant 0 : index
    %c0_2 = arith.constant 0 : index
    %1 = vector.load %arg2[%c0_1, %c0_2] : memref<256x12xf32, #tpu.memory_space<vmem>>, vector<256x12xf32>
    %cst = arith.constant dense<0.000000e+00> : vector<8x12xf32>
    %2 = tpu.matmul %0, %1, %cst {dimension_numbers = #tpu.dot_dimension_numbers<[1], [0], [0], [1], [0, 0, 1, 1], [], []>} : vector<8x256xf32>, vector<256x12xf32>, vector<8x12xf32> -> vector<8x12xf32>
    %c0_3 = arith.constant 0 : index
    %c0_4 = arith.constant 0 : index
    %3 = vector.load %arg3[%c0_3, %c0_4] : memref<1x12xf32, #tpu.memory_space<vmem>>, vector<1x12xf32>
    %4 = vector.broadcast %3 : vector<1x12xf32> to vector<8x12xf32>
    %5 = arith.cmpf oge, %2, %4 : vector<8x12xf32>
    %cst_5 = arith.constant 1.000000e+00 : f32
    %cst_6 = arith.constant 0.000000e+00 : f32
    %6 = vector.broadcast %cst_5 : f32 to vector<8x12xf32>
    %7 = vector.broadcast %cst_6 : f32 to vector<8x12xf32>
    %8 = arith.select %5, %6, %7 : vector<8x12xi1>, vector<8x12xf32>
    %c0_7 = arith.constant 0 : index
    %c0_8 = arith.constant 0 : index
    %9 = vector.load %arg4[%c0_7, %c0_8] : memref<8x12xf32, #tpu.memory_space<vmem>>, vector<8x12xf32>
    tpu.vector_store %arg4[%c0_7, %c0_8], %8 {strides = array<i32>} : memref<8x12xf32, #tpu.memory_space<vmem>>, vector<8x12xf32>,
    return
  }
  func.func @transform_0(%arg0: i32) -> (i32, i32) {
    %c0_i32 = arith.constant 0 : i32
    %c0_i32_0 = arith.constant 0 : i32
    return %arg0, %c0_i32 : i32, i32
  }
  func.func @transform_1(%arg0: i32) -> (i32, i32) {
    %c0_i32 = arith.constant 0 : i32
    %c0_i32_0 = arith.constant 0 : i32
    %c0_i32_1 = arith.constant 0 : i32
    return %c0_i32, %c0_i32_0 : i32, i32
  }
  func.func @transform_2(%arg0: i32) -> (i32, i32) {
    %c0_i32 = arith.constant 0 : i32
    %c0_i32_0 = arith.constant 0 : i32
    %c0_i32_1 = arith.constant 0 : i32
    return %c0_i32, %c0_i32_0 : i32, i32
  }
  func.func @transform_3(%arg0: i32) -> (i32, i32) {
    %c0_i32 = arith.constant 0 : i32
    %c0_i32_0 = arith.constant 0 : i32
    return %arg0, %c0_i32 : i32, i32
  }
}

</mosaic_0001>

<bundles_post_ra>
// kernel: tpu_custom_call.1
= control target key start
LH: loop header
LB: loop body
LE: loop exit
PB: predicated region body
PF: predicated region fallthrough
CT: control target
= control target key end

     0   :  { %8 = vsyncpa [#allocation3], 0  ;;  %s766_s0 = inlined_call_operand.vmem [shape: f32[16,256], index: 0, kind: input, shape index: {}]   ;;  %s767_s1 = inlined_call_operand.vmem [shape: f32[256,12], index: 1, kind: input, shape index: {}]   ;;  %s768_s2 = inlined_call_operand.vmem [shape: f32[1,12], index: 2, kind: input, shape index: {}]   ;;  %s769_s3 = inlined_call_operand.hbm [shape: f32[16,12], index: 3, kind: output, shape index: {}]  }
   0x1   :  { %10 = vsyncpa [#allocation3 + $0x1], 0  ;;  %s563_s12 = smov 0   ;;  %s565_s13 = smov 0  }
   0x2   :  { %s567_s14 = smov 0   ;;  %s569_s15 = smov 0  }
   0x3 LB: > { %s584_s16 = sadd.s32 4294967295, %s539_s15   ;;  %s357_s17 = sadd.s32 4294967294, %s539_s15   ;;  %s539_s15 = sphi %s569_s15, %s775_s15   ;;  %s535_s14 = sphi %s567_s14, %s774_s14   ;;  %s531_s13 = sphi %s565_s13, %s773_s13   ;;  %s527_s12 = sphi %s563_s12, %s772_s12  }
   0x4   : > { %s588_s18 = sadd.s32 1, %s539_s15   ;;  %s91_s19 = sadd.s32 1, %s535_s14 }
   0x5   : > { %s88_s20 = ssub.s32 %s539_s15, %s588_s18  ;;  %p101_p0 = scmp.ne.s32.totalorder %s535_s14, %s531_s13 }
   0x6   : > { %p89_p1 = scmp.eq.s32.totalorder %s88_s20, 0  ;;  %p102_p2 = scmp.eq.s32.totalorder %s584_s16, 1 }
   0x7   : > { %p107_p3 = scmp.ne.s32.totalorder %s531_s13, %s527_s12  ;;  %p108_p4 = scmp.eq.s32.totalorder %s357_s17, 1 }
   0x8   : > { %s599_s21 = scalar_select %p89_p1, %s535_s14, %s91_s19  }
   0x9   : > { %p601_p5 = por %p102_p2, %p101_p0  ;;  %p605_p6 = por %p108_p4, %p107_p3 }
   0xa   : > { %p360_p7 = scmp.ge.s32.totalorder %s539_s15, 1  ;;  %p140_p8 = scmp.lt.s32.totalorder %s539_s15, 3 }
   0xc   : > { %p141_p9 = pnand %p360_p7, %p140_p8 }
   0xd   : > { %v187_v0 = vld [vmem:[%s767_s1 + $0x80] sm:$0xff] (!%p141_p9)  ;;  %v188_v1 = vld [vmem:[%s767_s1 + $0x88] sm:$0xff] (!%p141_p9)  ;;  %p164_p10 = scmp.lt.s32.totalorder (!%p141_p9), %s584_s16, 1  ;;  %v189_v5 = vld [vmem:[%s767_s1 + $0x90] sm:$0xff] (!%p141_p9)  ;;  %s161_s20 = sand.u32 (!%p141_p9), 1, %s531_s13   ;;  %vm282_vm0 = vcmask (!%p141_p9), 97280  }
   0xe   : > { %144 = sbr.rel (%p141_p9) target bundleno = 279 (0x117), region = 32  ;;  %v171_v2 = vld [vmem:[%s767_s1] sm:$0xff] (!%p141_p9)  ;;  %v405_v3 = vpack.c.bf16 (!%p141_p9), %v188_v1, %v187_v0  ;;  %v172_v4 = vld [vmem:[%s767_s1 + $0x8] sm:$0xff] (!%p141_p9)  ;;  %v190_v6 = vld [vmem:[%s767_s1 + $0x98] sm:$0xff] (!%p141_p9)  ;;  %s366_s28 = sshll.u32 (!%p141_p9), %s584_s16, 7  ;;  %v541_v54 = vmov (!%p141_p9), 0.0  }
   0xf   : > { %v407_v7 = vpack.c.bf16 (!%p141_p9), %v172_v4, %v171_v2  ;;  %v409_v8 = vpack.c.bf16 (!%p141_p9), %v190_v6, %v189_v5  ;;  %v173_v9 = vld [vmem:[%s767_s1 + $0x10] sm:$0xff] (!%p141_p9)  ;;  %v174_v10 = vld [vmem:[%s767_s1 + $0x18] sm:$0xff] (!%p141_p9)  ;;  %v191_v11 = vld [vmem:[%s767_s1 + $0xa0] sm:$0xff] (!%p141_p9)  ;;  %s285_s5 = scalar_lea.sflag (!%p141_p9), [#allocation3], %s161_s20  ;;  %s542_s6 = smov (!%p141_p9), [#allocation2]  }
  0x10   : > { %406 = vmatprep.subr.bf16.mxu0 (!%p141_p9), %v405_v3  ;;  %v192_v12 = vld [vmem:[%s767_s1 + $0xa8] sm:$0xff] (!%p141_p9)  ;;  %v411_v13 = vpack.c.bf16 (!%p141_p9), %v174_v10, %v173_v9  ;;  %v175_v15 = vld [vmem:[%s767_s1 + $0x20] sm:$0xff] (!%p141_p9)  ;;  %v193_v17 = vld [vmem:[%s767_s1 + $0xb0] sm:$0xff] (!%p141_p9)  ;;  %s481_s7 = sshll.u32 (!%p141_p9), %s542_s6, 4  ;;  %s482_s7 = int_to_ptr.vmem [resolvable:$false] %s481_s7 }
  0x11   : > { %408 = vmatpush3.bf16.msra.mxu0 (!%p141_p9), %v407_v7  ;;  %v413_v14 = vpack.c.bf16 (!%p141_p9), %v192_v12, %v191_v11  ;;  %v176_v16 = vld [vmem:[%s767_s1 + $0x28] sm:$0xff] (!%p141_p9)  ;;  %v194_v18 = vld [vmem:[%s767_s1 + $0xb8] sm:$0xff] (!%p141_p9)  ;;  %v177_v21 = vld [vmem:[%s767_s1 + $0x30] sm:$0xff] (!%p141_p9)  ;;  %s483_s8 = scalar_lea.vmem (!%p141_p9), %s482_s7, 256 }
  0x12   : > { %410 = vmatprep.subr.bf16.mxu0 (!%p141_p9), %v409_v8  ;;  %v415_v19 = vpack.c.bf16 (!%p141_p9), %v176_v16, %v175_v15  ;;  %v417_v20 = vpack.c.bf16 (!%p141_p9), %v194_v18, %v193_v17  ;;  %v178_v22 = vld [vmem:[%s767_s1 + $0x38] sm:$0xff] (!%p141_p9)  ;;  %v195_v23 = vld [vmem:[%s767_s1 + $0xc0] sm:$0xff] (!%p141_p9)  ;;  %v196_v24 = vld [vmem:[%s767_s1 + $0xc8] sm:$0xff] (!%p141_p9) }
  0x13   : > { %v419_v26 = vpack.c.bf16 (!%p141_p9), %v178_v22, %v177_v21  ;;  %v421_v27 = vpack.c.bf16 (!%p141_p9), %v196_v24, %v195_v23  ;;  %v179_v28 = vld [vmem:[%s767_s1 + $0x40] sm:$0xff] (!%p141_p9)  ;;  %v180_v29 = vld [vmem:[%s767_s1 + $0x48] sm:$0xff] (!%p141_p9)  ;;  %v197_v30 = vld [vmem:[%s767_s1 + $0xd0] sm:$0xff] (!%p141_p9) }
  0x14   : > { %v198_v31 = vld [vmem:[%s767_s1 + $0xd8] sm:$0xff] (!%p141_p9)  ;;  %v423_v32 = vpack.c.bf16 (!%p141_p9), %v180_v29, %v179_v28  ;;  %v181_v34 = vld [vmem:[%s767_s1 + $0x50] sm:$0xff] (!%p141_p9)  ;;  %v199_v36 = vld [vmem:[%s767_s1 + $0xe0] sm:$0xff] (!%p141_p9) }
  0x15   : > { %s165_s24 = scalar_select %p164_p10, %s584_s16, 1  ;;  %412 = vmatpush3.bf16.msra.mxu0 %v411_v13  ;;  %v425_v33 = vpack.c.bf16 %v198_v31, %v197_v30  ;;  %v182_v35 = vld [vmem:[%s767_s1 + $0x58] sm:$0xff]  ;;  %v200_v37 = vld [vmem:[%s767_s1 + $0xe8] sm:$0xff]  ;;  %v183_v40 = vld [vmem:[%s767_s1 + $0x60] sm:$0xff] }
  0x16   : > { %414 = vmatprep.subr.bf16.mxu0 %v413_v14  ;;  %v427_v38 = vpack.c.bf16 %v182_v35, %v181_v34  ;;  %v429_v39 = vpack.c.bf16 %v200_v37, %v199_v36  ;;  %v184_v41 = vld [vmem:[%s767_s1 + $0x68] sm:$0xff]  ;;  %v201_v42 = vld [vmem:[%s767_s1 + $0xf0] sm:$0xff]  ;;  %v202_v43 = vld [vmem:[%s767_s1 + $0xf8] sm:$0xff] }
  0x17   : > { %s369_s27 = sshll.u32 %s165_s24, 4  ;;  %v431_v44 = vpack.c.bf16 %v184_v41, %v183_v40  ;;  %v433_v45 = vpack.c.bf16 %v202_v43, %v201_v42  ;;  %v185_v46 = vld [vmem:[%s767_s1 + $0x70] sm:$0xff]  ;;  %v186_v47 = vld [vmem:[%s767_s1 + $0x78] sm:$0xff]  ;;  %s361_s24 = sshll.u32 %s161_s20, 3  ;;  %v364_v52 = vld [vmem:[%s768_s2] ss:$0 sm:$0xff] }
  0x18   : > { %s658_s11 = scalar_lea.vmem %s766_s0, %s369_s27  ;;  %v435_v48 = vpack.c.bf16 %v186_v47, %v185_v46  ;;  %s163_s27 = scalar_lea.vmem [#allocation2], %s361_s24 }
  0x19   : > { %v170_v25 = vld [vmem:[%s658_s11 + $0x8] sm:$0xff]  ;;  %416 = vmatpush3.bf16.msra.mxu0 %v415_v19  ;;  %v169_v49 = vld [vmem:[%s658_s11] sm:$0xff]  ;;  %s298_s29 = sshll.u32 %s163_s27, 4  ;;  %s724_s11 = scalar_lea.hbm %s769_s3, %s366_s28  ;;  %s726_s29 = int_to_ptr.vmem [resolvable:$true] %s298_s29 }
  0x1a   : > { %267 = vmatprep.mubr.f32.mxu0 %v170_v25  ;;  %418 = vmatprep.subr.bf16.mxu0 %v417_v20  ;;  %s477_s16 = scalar_lea.vmem %s726_s29, 128  ;;  %p484_p0 = scmp.lt.s32.totalorder %s726_s29, %s482_s7 }
  0x1b   : > { %p478_p11 = scmp.ne.s32.totalorder %s726_s29, %s477_s16  ;;  %p485_p1 = scmp.lt.s32.totalorder %s483_s8, %s477_s16 }
  0x1d   : > { %420 = vmatpush3.bf16.msra.mxu0 %v419_v26  ;;  %p479_p12 = pnand %p478_p11, %p601_p5  ;;  %p486_p2 = por %p485_p1, %p484_p0 }
  0x1e   : > { %422 = vmatprep.subr.bf16.mxu0 %v421_v27 }
  0x1f   : > { %p480_p13 = pneg %p479_p12 }
  0x21   : > { %424 = vmatpush3.bf16.msra.mxu0 %v423_v32  ;;  %p487_p3 = pnand %p486_p2, %p480_p13 }
  0x22   : > { %426 = vmatprep.subr.bf16.mxu0 %v425_v33 }
  0x25   : > { %428 = vmatpush3.bf16.msra.mxu0 %v427_v38 }
  0x26   : > { %430 = vmatprep.subr.bf16.mxu0 %v429_v39 }
  0x29   : > { %432 = vmatpush3.bf16.msra.mxu0 %v431_v44 }
  0x2a   : > { %434 = vmatprep.subr.bf16.mxu0 %v433_v45 }
  0x2d   : > { %436 = vmatpush3.bf16.msra.mxu0 %v435_v48 }
  0x30   : > { %268 = vmatmul.mubr.f32.vlgmr.msra.gmra.mrb[0].mxu0 %v169_v49 }
 0x103   : > { %v402_v50 = vpop.f32.mrb[0].mxu0 }
 0x104   : > { %v403_v51 = vpop.f32.mrb[1].mxu0 }
 0x105   : > { %v404_v53 = vadd.f32 %v403_v51, %v402_v50 }
 0x107   : > { %vm280_vm1 = vcmp.ge.f32.partialorder %v404_v53, %v364_v52 }
 0x108   : > { %v281_v55 = vsel %vm280_vm1, 1.0, %v541_v54 }
 0x109   : > { %283 = vst.msk [vmem:[%s163_s27] sm:$0xff] %vm282_vm0, %v281_v55 }
 0x10a   : > { %490 = shalt.err (!%p487_p3)
}
 0x10b   : > { %s491_s9 = scalar_lea.hbm %s724_s11, 128  ;;  %s495_s19 = scalar_lea.hbm %s769_s3, 256 }
 0x10c   : > { %p492_p4 = scmp.ne.s32.totalorder %s724_s11, %s491_s9  ;;  %p496_p9 = scmp.lt.u32.totalorder %s724_s11, %s769_s3 }
 0x10d   : > { %p497_p10 = scmp.lt.u32.totalorder %s495_s19, %s491_s9  ;;  %p499_p12 = scmp.lt.u32.totalorder %s491_s9, %s724_s11 }
 0x10e   : > { %p493_p7 = pnand %p492_p4, %p601_p5 }
 0x10f   : > { %p498_p11 = por %p497_p10, %p496_p9 }
 0x110   : > { %p494_p8 = pneg %p493_p7 }
 0x111   : > { %p500_p13 = por %p499_p12, %p498_p11 }
 0x113   : > { %p501_p0 = pnand %p500_p13, %p494_p8 }
 0x115   : > { %504 = shalt.err (!%p501_p0)
}
 0x116   : > { %437 = dma.vmem_to_hbm [thread:$0]  (%p601_p5), %s726_s29, 128, %s724_s11, %s285_s5  }
 0x117 PF: > { %p443_p1 = scmp.ge.s32.totalorder %s539_s15, 2  ;;  %s310_s25 = sand.u32 1, %s527_s12  }
 0x118   : > { %s311_s26 = scalar_lea.sflag [#allocation3], %s310_s25 }
 0x119   : > { %p440_p2 = pnand %p443_p1, %p605_p6 }
 0x11b   : > { %522 = dma.done.wait (!%p440_p2), %s311_s26, 128  }
 0x11c   : > { %524 = vsyncadd (!%p440_p2), %s311_s26, 4294967168  ;;  %p13_p3 = scmp.ge.s32.totalorder %s588_s18, 4   ;;  %s772_s12 = smov %s531_s13 }
 0x11d   : > { %s773_s13 = smov %s535_s14  ;;  %s774_s14 = smov %s599_s21 }
 0x11e   : > { %s775_s15 = smov %s588_s18  ;;  %15 = sbr.rel (!%p13_p3) target bundleno = 3 (0x3), region = 67 }
 0x125   :  { %316 = vsyncpa [#allocation3], 1 }
 0x126   :  { %318 = vsyncpa [#allocation3 + $0x1], 1 }

</bundles_post_ra>
